<compile_context>
chip_gen: v6e
topology: v6e:2x2x1
jax: 0.10.0
libtpu: 0.0.40
codegen_flags: <defaults>
</compile_context>

<pallas_src>
import functools
import math
from collections import namedtuple

import jax
import jax.numpy as jnp
from jax.experimental import pallas as pl
from jax.experimental.pallas import tpu as pltpu

TM = 256          # rows (points) per grid step
LANE = 128        # lane padding for all feature dims
LN_EPS = 1e-5     # PyTorch LayerNorm default eps


def _round_up(x, m):
    return ((x + m - 1) // m) * m


# --------------------------------------------------------------------------
# activation / layernorm helpers (used both in-kernel and in the reference)
# --------------------------------------------------------------------------
def _apply_act(v, act, beta):
    if act is None:
        return v
    if act == "relu":
        return jnp.maximum(v, 0.0)
    if act == "tanh":
        return jnp.tanh(v)
    if act == "sine":
        return jnp.sin(v)
    if act == "swish":
        return jax.nn.sigmoid(beta * v) * v
    if act == "softplus":
        return jax.nn.softplus(beta * v) / beta
    raise ValueError(f"unknown activation {act}")


def _select_act(layer, num_linear, cfg):
    """Replicates the activation-selection precedence of DecoderSimple.forward."""
    if layer == num_linear - 1:                       # last linear: no hidden act
        return ("tanh" if cfg["use_tanh"] else None), 1.0
    if cfg["soft_plus_beta"] is not None and (layer == 0 or layer in cfg["latent_in"]):
        return "softplus", cfg["soft_plus_beta"]
    if cfg["sine"]:
        return "sine", 1.0
    if cfg["swish"]:
        return "swish", cfg["swish_beta"]
    return "relu", 1.0


def _layernorm_masked(v, gamma, beta, true_c):
    """LayerNorm over the last axis, ignoring padded lanes >= true_c."""
    cols = jax.lax.broadcasted_iota(jnp.int32, v.shape, 1)
    mask = cols < true_c
    vm = jnp.where(mask, v, 0.0)
    mean = jnp.sum(vm, axis=-1, keepdims=True) / true_c
    diff = jnp.where(mask, v - mean, 0.0)
    var = jnp.sum(diff * diff, axis=-1, keepdims=True) / true_c
    y = (v - mean) * jax.lax.rsqrt(var + LN_EPS)
    return jnp.where(mask, y * gamma + beta, 0.0)


# --------------------------------------------------------------------------
# Pallas kernel: whole MLP on one VMEM-resident tile of points
# --------------------------------------------------------------------------
_LayerSpec = namedtuple(
    "_LayerSpec", ["latent_in", "layernorm", "act", "act_beta", "true_out"]
)


def _make_mlp_kernel(layer_specs):
    n = len(layer_specs)

    def kernel(*refs):
        x_ref = refs[0]
        o_ref = refs[-1]
        h = x_ref[...]                       # (TM, K0p) bf16
        x_in = h                             # kept for latent_in concat
        idx = 1
        for l, sp in enumerate(layer_specs):
            w_ref = refs[idx]
            b_ref = refs[idx + 1]
            idx += 2
            if sp.layernorm:
                g_ref = refs[idx]
                bb_ref = refs[idx + 1]
                idx += 2
            if sp.latent_in:
                # concat with the VMEM-resident input tile (no HBM round trip)
                h = jnp.concatenate([h, x_in], axis=-1)
            acc = jnp.dot(h, w_ref[...], preferred_element_type=jnp.float32)
            acc = acc + b_ref[...]
            acc = _apply_act(acc, sp.act, sp.act_beta)
            if sp.layernorm:
                acc = _layernorm_masked(acc, g_ref[...], bb_ref[...], sp.true_out)
            # bf16 for the next MXU matmul; keep final layer in f32
            h = acc.astype(jnp.bfloat16) if l < n - 1 else acc
        o_ref[...] = h.astype(o_ref.dtype)

    return kernel


# --------------------------------------------------------------------------
# Forward wrapper: pad / cast / build specs, one pallas_call, slice back
# --------------------------------------------------------------------------
def decoder_forward(params, x, *, config):
    layers = params["layers"]
    n = len(layers)

    lead = x.shape[:-1]
    d0 = x.shape[-1]
    M = math.prod(lead) if lead else 1
    xf = x.reshape(M, d0).astype(jnp.float32)

    Mp = _round_up(max(M, 1), TM)
    K0p = _round_up(d0, LANE)
    x_p = jnp.pad(xf, ((0, Mp - M), (0, K0p - d0))).astype(jnp.bfloat16)

    inputs = [x_p]
    in_specs = [pl.BlockSpec((TM, K0p), lambda i: (i, 0))]
    layer_specs = []

    prev_cp = K0p      # padded width of the running feature tensor h
    prev_true = d0     # true (unpadded) width of h

    for l, lp in enumerate(layers):
        w, b = lp["w"], lp["b"]          # w: (in_features, out_features)
        in_f, out_f = w.shape
        cp_out = _round_up(out_f, LANE)
        is_latent = l in config["latent_in"]

        if is_latent:
            # rows [0:k_h) act on h, rows [prev_cp:prev_cp+d0) act on the input
            k_h = in_f - d0
            kin_p = prev_cp + K0p
            w_pad = jnp.zeros((kin_p, cp_out), jnp.float32)
            w_pad = w_pad.at[:k_h, :out_f].set(w[:k_h])
            w_pad = w_pad.at[prev_cp:prev_cp + d0, :out_f].set(w[k_h:])
        else:
            kin_p = prev_cp
            w_pad = jnp.zeros((kin_p, cp_out), jnp.float32)
            w_pad = w_pad.at[:in_f, :out_f].set(w)
        w_pad = w_pad.astype(jnp.bfloat16)
        b_pad = jnp.zeros((1, cp_out), jnp.float32).at[0, :out_f].set(b)

        inputs += [w_pad, b_pad]
        in_specs += [
            pl.BlockSpec((kin_p, cp_out), lambda i: (0, 0)),
            pl.BlockSpec((1, cp_out), lambda i: (0, 0)),
        ]

        has_ln = "ln_g" in lp
        if has_ln:
            g_pad = jnp.zeros((1, cp_out), jnp.float32).at[0, :out_f].set(lp["ln_g"])
            bt_pad = jnp.zeros((1, cp_out), jnp.float32).at[0, :out_f].set(lp["ln_b"])
            inputs += [g_pad, bt_pad]
            in_specs += [pl.BlockSpec((1, cp_out), lambda i: (0, 0))] * 2

        act, beta = _select_act(l, n, config)
        layer_specs.append(
            _LayerSpec(latent_in=is_latent, layernorm=has_ln,
                       act=act, act_beta=beta, true_out=out_f)
        )
        prev_cp = cp_out
        prev_true = out_f

    out = pl.pallas_call(
        _make_mlp_kernel(tuple(layer_specs)),
        out_shape=jax.ShapeDtypeStruct((Mp, prev_cp), jnp.float32),
        grid=(Mp // TM,),
        in_specs=in_specs,
        out_specs=pl.BlockSpec((TM, prev_cp), lambda i: (i, 0)),
        compiler_params=pltpu.CompilerParams(
            dimension_semantics=("parallel",),
            vmem_limit_bytes=32 * 1024 * 1024,
        ),
    )(*inputs)

    return out[:M, :prev_true].reshape(*lead, prev_true)


# --------------------------------------------------------------------------
# Pure-JAX reference (for correctness check)
# --------------------------------------------------------------------------
def reference_forward(params, x, config):
    layers = params["layers"]
    n = len(layers)
    lead = x.shape[:-1]
    h = x.reshape(-1, x.shape[-1]).astype(jnp.float32)
    inp = h
    for l, lp in enumerate(layers):
        act, beta = _select_act(l, n, config)
        if l in config["latent_in"]:
            h = jnp.concatenate([h, inp], axis=-1)
        h = h @ lp["w"] + lp["b"]
        h = _apply_act(h, act, beta)
        if "ln_g" in lp and l < n - 1:
            mu = jnp.mean(h, axis=-1, keepdims=True)
            var = jnp.mean((h - mu) ** 2, axis=-1, keepdims=True)
            h = (h - mu) * jax.lax.rsqrt(var + LN_EPS) * lp["ln_g"] + lp["ln_b"]
    return h.reshape(*lead, layers[-1]["w"].shape[1])


# --------------------------------------------------------------------------
# Deterministic init (matches PyTorch nn.Linear default distributions)
# --------------------------------------------------------------------------
def init_params(key, latent_size, dims, input_dim, *, out_dim=1, latent_in=(),
                norm_layers=(), layer_norm=False):
    full_dims = [latent_size + input_dim] + list(dims) + [out_dim]
    num_layers = len(full_dims)
    layers = []
    for layer in range(num_layers - 1):
        if (layer + 1) in latent_in:
            o = full_dims[layer + 1] - full_dims[0]
        else:
            o = full_dims[layer + 1]
        in_f = full_dims[layer]
        key, kw, kb = jax.random.split(key, 3)
        bound = 1.0 / math.sqrt(in_f)
        w = jax.random.uniform(kw, (in_f, o), jnp.float32, -bound, bound)
        b = jax.random.uniform(kb, (o,), jnp.float32, -bound, bound)
        d = {"w": w, "b": b}
        if layer_norm and layer in norm_layers and layer < num_layers - 2:
            d["ln_g"] = jnp.ones((o,), jnp.float32)
            d["ln_b"] = jnp.zeros((o,), jnp.float32)
        layers.append(d)
    return {"layers": layers}


if __name__ == "__main__":
    latent_size, input_dim, out_dim = 29, 3, 1
    dims = [64, 64, 64]
    B, NPTS = 2, 1024          # 2048 points -> 8 M-tiles of 256 (pipelines / megacore)

    cfg = dict(latent_in=(), use_tanh=True, sine=False, swish=False,
               swish_beta=1.0, soft_plus_beta=None,
               layer_norm=False, norm_layers=(), dropout=None)

    key = jax.random.PRNGKey(0)
    kx, kp = jax.random.split(key)
    x = jax.random.normal(kx, (B, NPTS, latent_size + input_dim), dtype=jnp.float32)
    params = init_params(kp, latent_size, dims, input_dim, out_dim=out_dim,
                         latent_in=cfg["latent_in"],
                         norm_layers=cfg["norm_layers"],
                         layer_norm=cfg["layer_norm"])

    fwd = jax.jit(functools.partial(decoder_forward, config=cfg))
    out = fwd(params, x)
    jax.block_until_ready(out)

    assert out.shape == (B, NPTS, out_dim), out.shape
    assert bool(jnp.all(jnp.isfinite(out)))

    ref = reference_forward(params, x, cfg)
    max_err = float(jnp.max(jnp.abs(out - ref)))
    assert max_err < 5e-2, f"max abs error vs reference: {max_err}"

    print("KERNEL_OK")
</pallas_src>

<mosaic_0001>
module attributes {stable_mosaic.version = 11 : i64} {
  func.func @kernel(%arg0: i32, %arg1: memref<256x128xbf16, #tpu.memory_space<vmem>>, %arg2: memref<128x128xbf16, #tpu.memory_space<vmem>>, %arg3: memref<1x128xf32, #tpu.memory_space<vmem>>, %arg4: memref<128x128xbf16, #tpu.memory_space<vmem>>, %arg5: memref<1x128xf32, #tpu.memory_space<vmem>>, %arg6: memref<128x128xbf16, #tpu.memory_space<vmem>>, %arg7: memref<1x128xf32, #tpu.memory_space<vmem>>, %arg8: memref<128x128xbf16, #tpu.memory_space<vmem>>, %arg9: memref<1x128xf32, #tpu.memory_space<vmem>>, %arg10: memref<256x128xf32, #tpu.memory_space<vmem>>) attributes {dimension_semantics = [#tpu.dimension_semantics<parallel>], iteration_bounds = array<i64: 8>, scalar_prefetch = 0 : i64, scratch_operands = 0 : i64, tpu.core_type = #tpu.core_type<tc>, window_params = [{transform_indices = @transform_0, window_bounds = array<i64: 256, 128>}, {pipeline_mode = #tpu.pipeline_mode<synchronous>, transform_indices = @transform_1, window_bounds = array<i64: 128, 128>}, {pipeline_mode = #tpu.pipeline_mode<synchronous>, transform_indices = @transform_2, window_bounds = array<i64: 1, 128>}, {pipeline_mode = #tpu.pipeline_mode<synchronous>, transform_indices = @transform_3, window_bounds = array<i64: 128, 128>}, {pipeline_mode = #tpu.pipeline_mode<synchronous>, transform_indices = @transform_4, window_bounds = array<i64: 1, 128>}, {pipeline_mode = #tpu.pipeline_mode<synchronous>, transform_indices = @transform_5, window_bounds = array<i64: 128, 128>}, {pipeline_mode = #tpu.pipeline_mode<synchronous>, transform_indices = @transform_6, window_bounds = array<i64: 1, 128>}, {pipeline_mode = #tpu.pipeline_mode<synchronous>, transform_indices = @transform_7, window_bounds = array<i64: 128, 128>}, {pipeline_mode = #tpu.pipeline_mode<synchronous>, transform_indices = @transform_8, window_bounds = array<i64: 1, 128>}, {transform_indices = @transform_9, window_bounds = array<i64: 256, 128>}]} {
    %c0 = arith.constant 0 : index
    %c0_0 = arith.constant 0 : index
    %0 = vector.load %arg1[%c0, %c0_0] : memref<256x128xbf16, #tpu.memory_space<vmem>>, vector<256x128xbf16>
    %c0_1 = arith.constant 0 : index
    %c0_2 = arith.constant 0 : index
    %1 = vector.load %arg2[%c0_1, %c0_2] : memref<128x128xbf16, #tpu.memory_space<vmem>>, vector<128x128xbf16>
    %cst = arith.constant dense<0.000000e+00> : vector<256x128xf32>
    %2 = tpu.matmul %0, %1, %cst {dimension_numbers = #tpu.dot_dimension_numbers<[1], [0], [0], [1], [0, 0, 1, 1], [], []>} : vector<256x128xbf16>, vector<128x128xbf16>, vector<256x128xf32> -> vector<256x128xf32>
    %c0_3 = arith.constant 0 : index
    %c0_4 = arith.constant 0 : index
    %3 = vector.load %arg3[%c0_3, %c0_4] : memref<1x128xf32, #tpu.memory_space<vmem>>, vector<1x128xf32>
    %4 = vector.broadcast %3 : vector<1x128xf32> to vector<256x128xf32>
    %5 = arith.addf %2, %4 : vector<256x128xf32>
    %cst_5 = arith.constant 0.000000e+00 : f32
    %6 = vector.broadcast %cst_5 : f32 to vector<256x128xf32>
    %7 = arith.maximumf %5, %6 : vector<256x128xf32>
    %8 = arith.truncf %7 : vector<256x128xf32> to vector<256x128xbf16>
    %c0_6 = arith.constant 0 : index
    %c0_7 = arith.constant 0 : index
    %9 = vector.load %arg4[%c0_6, %c0_7] : memref<128x128xbf16, #tpu.memory_space<vmem>>, vector<128x128xbf16>
    %cst_8 = arith.constant dense<0.000000e+00> : vector<256x128xf32>
    %10 = tpu.matmul %8, %9, %cst_8 {dimension_numbers = #tpu.dot_dimension_numbers<[1], [0], [0], [1], [0, 0, 1, 1], [], []>} : vector<256x128xbf16>, vector<128x128xbf16>, vector<256x128xf32> -> vector<256x128xf32>
    %c0_9 = arith.constant 0 : index
    %c0_10 = arith.constant 0 : index
    %11 = vector.load %arg5[%c0_9, %c0_10] : memref<1x128xf32, #tpu.memory_space<vmem>>, vector<1x128xf32>
    %12 = vector.broadcast %11 : vector<1x128xf32> to vector<256x128xf32>
    %13 = arith.addf %10, %12 : vector<256x128xf32>
    %cst_11 = arith.constant 0.000000e+00 : f32
    %14 = vector.broadcast %cst_11 : f32 to vector<256x128xf32>
    %15 = arith.maximumf %13, %14 : vector<256x128xf32>
    %16 = arith.truncf %15 : vector<256x128xf32> to vector<256x128xbf16>
    %c0_12 = arith.constant 0 : index
    %c0_13 = arith.constant 0 : index
    %17 = vector.load %arg6[%c0_12, %c0_13] : memref<128x128xbf16, #tpu.memory_space<vmem>>, vector<128x128xbf16>
    %cst_14 = arith.constant dense<0.000000e+00> : vector<256x128xf32>
    %18 = tpu.matmul %16, %17, %cst_14 {dimension_numbers = #tpu.dot_dimension_numbers<[1], [0], [0], [1], [0, 0, 1, 1], [], []>} : vector<256x128xbf16>, vector<128x128xbf16>, vector<256x128xf32> -> vector<256x128xf32>
    %c0_15 = arith.constant 0 : index
    %c0_16 = arith.constant 0 : index
    %19 = vector.load %arg7[%c0_15, %c0_16] : memref<1x128xf32, #tpu.memory_space<vmem>>, vector<1x128xf32>
    %20 = vector.broadcast %19 : vector<1x128xf32> to vector<256x128xf32>
    %21 = arith.addf %18, %20 : vector<256x128xf32>
    %cst_17 = arith.constant 0.000000e+00 : f32
    %22 = vector.broadcast %cst_17 : f32 to vector<256x128xf32>
    %23 = arith.maximumf %21, %22 : vector<256x128xf32>
    %24 = arith.truncf %23 : vector<256x128xf32> to vector<256x128xbf16>
    %c0_18 = arith.constant 0 : index
    %c0_19 = arith.constant 0 : index
    %25 = vector.load %arg8[%c0_18, %c0_19] : memref<128x128xbf16, #tpu.memory_space<vmem>>, vector<128x128xbf16>
    %cst_20 = arith.constant dense<0.000000e+00> : vector<256x128xf32>
    %26 = tpu.matmul %24, %25, %cst_20 {dimension_numbers = #tpu.dot_dimension_numbers<[1], [0], [0], [1], [0, 0, 1, 1], [], []>} : vector<256x128xbf16>, vector<128x128xbf16>, vector<256x128xf32> -> vector<256x128xf32>
    %c0_21 = arith.constant 0 : index
    %c0_22 = arith.constant 0 : index
    %27 = vector.load %arg9[%c0_21, %c0_22] : memref<1x128xf32, #tpu.memory_space<vmem>>, vector<1x128xf32>
    %28 = vector.broadcast %27 : vector<1x128xf32> to vector<256x128xf32>
    %29 = arith.addf %26, %28 : vector<256x128xf32>
    %30 = math.tanh %29 : vector<256x128xf32>
    %c0_23 = arith.constant 0 : index
    %c0_24 = arith.constant 0 : index
    %31 = vector.load %arg10[%c0_23, %c0_24] : memref<256x128xf32, #tpu.memory_space<vmem>>, vector<256x128xf32>
    tpu.vector_store %arg10[%c0_23, %c0_24], %30 {strides = array<i32>} : memref<256x128xf32, #tpu.memory_space<vmem>>, vector<256x128xf32>,
    return
  }
  func.func @transform_0(%arg0: i32) -> (i32, i32) {
    %c0_i32 = arith.constant 0 : i32
    %c0_i32_0 = arith.constant 0 : i32
    return %arg0, %c0_i32 : i32, i32
  }
  func.func @transform_1(%arg0: i32) -> (i32, i32) {
    %c0_i32 = arith.constant 0 : i32
    %c0_i32_0 = arith.constant 0 : i32
    %c0_i32_1 = arith.constant 0 : i32
    return %c0_i32, %c0_i32_0 : i32, i32
  }
  func.func @transform_2(%arg0: i32) -> (i32, i32) {
    %c0_i32 = arith.constant 0 : i32
    %c0_i32_0 = arith.constant 0 : i32
    %c0_i32_1 = arith.constant 0 : i32
    return %c0_i32, %c0_i32_0 : i32, i32
  }
  func.func @transform_3(%arg0: i32) -> (i32, i32) {
    %c0_i32 = arith.constant 0 : i32
    %c0_i32_0 = arith.constant 0 : i32
    %c0_i32_1 = arith.constant 0 : i32
    return %c0_i32, %c0_i32_0 : i32, i32
  }
  func.func @transform_4(%arg0: i32) -> (i32, i32) {
    %c0_i32 = arith.constant 0 : i32
    %c0_i32_0 = arith.constant 0 : i32
    %c0_i32_1 = arith.constant 0 : i32
    return %c0_i32, %c0_i32_0 : i32, i32
  }
  func.func @transform_5(%arg0: i32) -> (i32, i32) {
    %c0_i32 = arith.constant 0 : i32
    %c0_i32_0 = arith.constant 0 : i32
    %c0_i32_1 = arith.constant 0 : i32
    return %c0_i32, %c0_i32_0 : i32, i32
  }
  func.func @transform_6(%arg0: i32) -> (i32, i32) {
    %c0_i32 = arith.constant 0 : i32
    %c0_i32_0 = arith.constant 0 : i32
    %c0_i32_1 = arith.constant 0 : i32
    return %c0_i32, %c0_i32_0 : i32, i32
  }
  func.func @transform_7(%arg0: i32) -> (i32, i32) {
    %c0_i32 = arith.constant 0 : i32
    %c0_i32_0 = arith.constant 0 : i32
    %c0_i32_1 = arith.constant 0 : i32
    return %c0_i32, %c0_i32_0 : i32, i32
  }
  func.func @transform_8(%arg0: i32) -> (i32, i32) {
    %c0_i32 = arith.constant 0 : i32
    %c0_i32_0 = arith.constant 0 : i32
    %c0_i32_1 = arith.constant 0 : i32
    return %c0_i32, %c0_i32_0 : i32, i32
  }
  func.func @transform_9(%arg0: i32) -> (i32, i32) {
    %c0_i32 = arith.constant 0 : i32
    %c0_i32_0 = arith.constant 0 : i32
    return %arg0, %c0_i32 : i32, i32
  }
}

</mosaic_0001>

<bundles_post_ra>
// kernel: decoder_forward.1
= control target key start
LH: loop header
LB: loop body
LE: loop exit
PB: predicated region body
PF: predicated region fallthrough
CT: control target
= control target key end

     0   :  { %s2186_s30 = smov 0   ;;  %s2503_s0 = inlined_call_operand.vmem [shape: bf16[2048,128], index: 0, kind: input, shape index: {}]   ;;  %s2504_s1 = inlined_call_operand.vmem [shape: bf16[128,128], index: 1, kind: input, shape index: {}]   ;;  %s2505_s2 = inlined_call_operand.vmem [shape: f32[1,128], index: 2, kind: input, shape index: {}]   ;;  %s2506_s3 = inlined_call_operand.vmem [shape: bf16[128,128], index: 3, kind: input, shape index: {}]   ;;  %s2507_s4 = inlined_call_operand.vmem [shape: f32[1,128], index: 4, kind: input, shape index: {}]   ;;  %s2508_s5 = inlined_call_operand.vmem [shape: bf16[128,128], index: 5, kind: input, shape index: {}]   ;;  %s2509_s6 = inlined_call_operand.vmem [shape: f32[1,128], index: 6, kind: input, shape index: {}]   ;;  %s2510_s7 = inlined_call_operand.vmem [shape: bf16[128,128], index: 7, kind: input, shape index: {}]   ;;  %s2511_s8 = inlined_call_operand.vmem [shape: f32[1,128], index: 8, kind: input, shape index: {}]   ;;  %s2512_s9 = inlined_call_operand.vmem [shape: f32[2048,128], index: 9, kind: output, shape index: {}]  }
   0x1 LB: > { %s1657_s10 = sadd.s32 4294967295, %s2134_s30   ;;  %p1661_p0 = scmp.ge.s32.totalorder %s2134_s30, 1  ;;  %s2134_s30 = sphi %s2186_s30, %s19_s30  }
   0x2   : > { %p288_p1 = scmp.lt.s32.totalorder %s2134_s30, 9 }
   0x4   : > { %p289_p2 = pnand %p1661_p0, %p288_p1 }
   0x5   : > { %s1662_s13 = sshll.u32 (!%p289_p2), %s1657_s10, 5 }
   0x6   : > { %292 = sbr.rel (%p289_p2) target bundleno = 934 (0x3a6), region = 56  ;;  %p325_p3 = scmp.lt.s32.totalorder (!%p289_p2), %s1662_s13, 255 }
   0xb   : > { %v2016_v0 = vld [vmem:[%s2504_s1 + $0x38] sm:$0xff]   ;;  %v2017_v1 = vld [vmem:[%s2504_s1 + $0x30] sm:$0xff]   ;;  %s2514_s13 = smov (!%p325_p3, %s1662_s13), 255  ;;  %v2018_v2 = vld [vmem:[%s2504_s1 + $0x28] sm:$0xff]  }
   0xc   : > { %1816 = vmatprep.subr.bf16.mxu0 %v2016_v0  ;;  %s1663_s18 = sshll.u32 %s2514_s13, 2  ;;  %v2019_v3 = vld [vmem:[%s2504_s1 + $0x20] sm:$0xff]   ;;  %v2020_v5 = vld [vmem:[%s2504_s1 + $0x18] sm:$0xff]   ;;  %v2021_v6 = vld [vmem:[%s2504_s1 + $0x10] sm:$0xff]   ;;  %s1665_s11 = sshll.u32 %s2514_s13, 3 }
   0xd   : > { %1817 = vmatpush3.bf16.msra.mxu0 %v2016_v0  ;;  %s2209_s21 = scalar_lea.vmem %s2503_s0, %s1663_s18  ;;  %v2022_v7 = vld [vmem:[%s2504_s1 + $0x8] sm:$0xff]   ;;  %v2023_v8 = vld [vmem:[%s2504_s1] sm:$0xff]   ;;  %v2040_v9 = vld [vmem:[%s2506_s3 + $0x38] sm:$0xff]   ;;  %s2441_s15 = scalar_lea.vmem %s2512_s9, %s1665_s11 }
   0xe   : > { %1818 = vmatprep.subr.bf16.mxu0 %v2017_v1  ;;  %v2024_v4 = vld [vmem:[%s2209_s21] sm:$0xff]   ;;  %v2041_v10 = vld [vmem:[%s2506_s3 + $0x30] sm:$0xff]   ;;  %1864 = vmatprep.subr.bf16.mxu1 %v2040_v9  ;;  %v2025_v11 = vld [vmem:[%s2209_s21 + $0x8] sm:$0xff]  }
   0xf   : > { %1832 = vmatprep.mubr.bf16.mxu0 %v2024_v4  ;;  %1865 = vmatpush3.bf16.msra.mxu1 %v2040_v9  ;;  %v2042_v12 = vld [vmem:[%s2506_s3 + $0x28] sm:$0xff]   ;;  %v2026_v13 = vld [vmem:[%s2209_s21 + $0x10] sm:$0xff]   ;;  %v2043_v14 = vld [vmem:[%s2506_s3 + $0x20] sm:$0xff]  }
  0x10   : > { %1866 = vmatprep.subr.bf16.mxu1 %v2041_v10  ;;  %v2044_v15 = vld [vmem:[%s2506_s3 + $0x18] sm:$0xff]   ;;  %v2028_v17 = vld [vmem:[%s2209_s21 + $0x20] sm:$0xff]   ;;  %v2029_v18 = vld [vmem:[%s2209_s21 + $0x28] sm:$0xff]  }
  0x11   : > { %1819 = vmatpush3.bf16.msra.mxu0 %v2017_v1  ;;  %v2027_v16 = vld [vmem:[%s2209_s21 + $0x18] sm:$0xff]   ;;  %v2030_v19 = vld [vmem:[%s2209_s21 + $0x30] sm:$0xff]   ;;  %v2032_v21 = vld [vmem:[%s2209_s21 + $0x40] sm:$0xff]  }
  0x12   : > { %1820 = vmatprep.subr.bf16.mxu0 %v2018_v2  ;;  %v2031_v20 = vld [vmem:[%s2209_s21 + $0x38] sm:$0xff]   ;;  %v2033_v22 = vld [vmem:[%s2209_s21 + $0x48] sm:$0xff]   ;;  %v2034_v23 = vld [vmem:[%s2209_s21 + $0x50] sm:$0xff]  }
  0x13   : > { %1867 = vmatpush3.bf16.msra.mxu1 %v2041_v10  ;;  %v2035_v24 = vld [vmem:[%s2209_s21 + $0x58] sm:$0xff]   ;;  %v2036_v25 = vld [vmem:[%s2209_s21 + $0x60] sm:$0xff]   ;;  %v2037_v26 = vld [vmem:[%s2209_s21 + $0x68] sm:$0xff]  }
  0x14   : > { %1868 = vmatprep.subr.bf16.mxu1 %v2042_v12  ;;  %v2038_v27 = vld [vmem:[%s2209_s21 + $0x70] sm:$0xff]   ;;  %v2039_v28 = vld [vmem:[%s2209_s21 + $0x78] sm:$0xff]   ;;  %v2046_v30 = vld [vmem:[%s2506_s3 + $0x8] sm:$0xff]  }
  0x15   : > { %1821 = vmatpush3.bf16.msra.mxu0 %v2018_v2  ;;  %v2045_v29 = vld [vmem:[%s2506_s3 + $0x10] sm:$0xff]   ;;  %v2047_v31 = vld [vmem:[%s2506_s3] sm:$0xff]   ;;  %v2048_v32 = vld [vmem:[%s2508_s5 + $0x38] sm:$0xff]  }
  0x16   : > { %1822 = vmatprep.subr.bf16.mxu0 %v2019_v3  ;;  %v2049_v33 = vld [vmem:[%s2508_s5 + $0x30] sm:$0xff]   ;;  %v2050_v34 = vld [vmem:[%s2508_s5 + $0x28] sm:$0xff]   ;;  %v2051_v35 = vld [vmem:[%s2508_s5 + $0x20] sm:$0xff]  }
  0x17   : > { %1869 = vmatpush3.bf16.msra.mxu1 %v2042_v12  ;;  %v2052_v36 = vld [vmem:[%s2508_s5 + $0x18] sm:$0xff]   ;;  %v2053_v37 = vld [vmem:[%s2508_s5 + $0x10] sm:$0xff]   ;;  %v2054_v38 = vld [vmem:[%s2508_s5 + $0x8] sm:$0xff]  }
  0x18   : > { %1870 = vmatprep.subr.bf16.mxu1 %v2043_v14  ;;  %v2290_v41 = vld [vmem:[%s2505_s2] ss:$0 sm:$0xff] }
  0x19   : > { %1823 = vmatpush3.bf16.msra.mxu0 %v2019_v3 }
  0x1a   : > { %1824 = vmatprep.subr.bf16.mxu0 %v2020_v5 }
  0x1b   : > { %1871 = vmatpush3.bf16.msra.mxu1 %v2043_v14 }
  0x1c   : > { %1872 = vmatprep.subr.bf16.mxu1 %v2044_v15 }
  0x1d   : > { %1825 = vmatpush3.bf16.msra.mxu0 %v2020_v5 }
  0x1e   : > { %1826 = vmatprep.subr.bf16.mxu0 %v2021_v6 }
  0x1f   : > { %1873 = vmatpush3.bf16.msra.mxu1 %v2044_v15 }
  0x20   : > { %1874 = vmatprep.subr.bf16.mxu1 %v2045_v29 }
  0x21   : > { %1827 = vmatpush3.bf16.msra.mxu0 %v2021_v6 }
  0x22   : > { %1828 = vmatprep.subr.bf16.mxu0 %v2022_v7 }
  0x23   : > { %1875 = vmatpush3.bf16.msra.mxu1 %v2045_v29 }
  0x24   : > { %1876 = vmatprep.subr.bf16.mxu1 %v2046_v30 }
  0x25   : > { %1829 = vmatpush3.bf16.msra.mxu0 %v2022_v7 }
  0x26   : > { %1830 = vmatprep.subr.bf16.mxu0 %v2023_v8 }
  0x27   : > { %1877 = vmatpush3.bf16.msra.mxu1 %v2046_v30 }
  0x28   : > { %1878 = vmatprep.subr.bf16.mxu1 %v2047_v31 }
  0x29   : > { %1831 = vmatpush3.bf16.msra.mxu0 %v2023_v8 }
  0x2a   : > { %1912 = vmatprep.subr.bf16.mxu0 %v2048_v32 }
  0x2b   : > { %1879 = vmatpush3.bf16.msra.mxu1 %v2047_v31 }
  0x2c   : > { %1833 = vmatmul.mubr.bf16.vlgmr.msra.gmra.mxu0 %v2025_v11 }
  0x2d   : > { %1836 = vmatprep.mubr.bf16.mxu0 %v2026_v13  ;;  %1913 = vmatpush3.bf16.msra.mxu0 %v2048_v32 }
  0x2e   : > { %1914 = vmatprep.subr.bf16.mxu0 %v2049_v33 }
  0x31   : > { %1915 = vmatpush3.bf16.msra.mxu0 %v2049_v33 }
  0x32   : > { %1916 = vmatprep.subr.bf16.mxu0 %v2050_v34 }
  0x34   : > { %1837 = vmatmul.mubr.bf16.gmra.mxu0 %v2027_v16 }
  0x35   : > { %1840 = vmatprep.mubr.bf16.mxu0 %v2028_v17  ;;  %1917 = vmatpush3.bf16.msra.mxu0 %v2050_v34 }
  0x36   : > { %1918 = vmatprep.subr.bf16.mxu0 %v2051_v35 }
  0x39   : > { %1919 = vmatpush3.bf16.msra.mxu0 %v2051_v35 }
  0x3a   : > { %1920 = vmatprep.subr.bf16.mxu0 %v2052_v36 }
  0x3c   : > { %1841 = vmatmul.mubr.bf16.gmra.mxu0 %v2029_v18 }
  0x3d   : > { %1844 = vmatprep.mubr.bf16.mxu0 %v2030_v19  ;;  %1921 = vmatpush3.bf16.msra.mxu0 %v2052_v36 }
  0x3e   : > { %1922 = vmatprep.subr.bf16.mxu0 %v2053_v37 }
  0x41   : > { %1923 = vmatpush3.bf16.msra.mxu0 %v2053_v37 }
  0x42   : > { %1924 = vmatprep.subr.bf16.mxu0 %v2054_v38 }
  0x44   : > { %1845 = vmatmul.mubr.bf16.gmra.mxu0 %v2031_v20 }
  0x45   : > { %1848 = vmatprep.mubr.bf16.mxu0 %v2032_v21  ;;  %1925 = vmatpush3.bf16.msra.mxu0 %v2054_v38 }
  0x4c   : > { %1849 = vmatmul.mubr.bf16.gmra.mxu0 %v2033_v22 }
  0x4d   : > { %1852 = vmatprep.mubr.bf16.mxu0 %v2034_v23 }
  0x54   : > { %1853 = vmatmul.mubr.bf16.gmra.mxu0 %v2035_v24 }
  0x55   : > { %1856 = vmatprep.mubr.bf16.mxu0 %v2036_v25 }
  0x5c   : > { %1857 = vmatmul.mubr.bf16.gmra.mxu0 %v2037_v26 }
  0x5d   : > { %1860 = vmatprep.mubr.bf16.mxu0 %v2038_v27 }
  0x64   : > { %1861 = vmatmul.mubr.bf16.gmra.mxu0 %v2039_v28 }
  0xec   : > { %v1834_v39 = vpop.f32.mrf.mxu0 }
  0xed   : > { %v579_v45 = vadd.f32 %v1834_v39, %v2290_v41 }
  0xee   : > { %v570_v40 = vpop.f32.mrf.mxu0 }
  0xef   : > { %v571_v43 = vadd.f32 %v2290_v41, %v570_v40  ;;  %v699_v52 = vmax.f32 %v579_v45, 0.0 }
  0xf0   : > { %v1835_v42 = vpop.f32.mrf.mxu0 }
  0xf1   : > { %v582_v44 = vadd.f32 %v1835_v42, %v2290_v41  ;;  %v697_v50 = vmax.f32 %v571_v43, 0.0 }
  0xf2   : > { %v573_v46 = vpop.f32.mrf.mxu0 }
  0xf3   : > { %v574_v47 = vadd.f32 %v2290_v41, %v573_v46  ;;  %v700_v48 = vmax.f32 %v582_v44, 0.0 }
  0xf4   : > { %v1838_v49 = vpop.f32.mrf.mxu0 }
  0xf5   : > { %v698_v51 = vmax.f32 %v574_v47, 0.0  ;;  %v730_v55 = vpack.c.bf16 %v700_v48, %v699_v52  ;;  %v595_v59 = vadd.f32 %v1838_v49, %v2290_v41 }
  0xf6   : > { %v586_v53 = vpop.f32.mrf.mxu0 }
  0xf7   : > { %v729_v54 = vpack.c.bf16 %v698_v51, %v697_v50  ;;  %v587_v57 = vadd.f32 %v2290_v41, %v586_v53  ;;  %v703_v2 = vmax.f32 %v595_v59, 0.0 }
  0xf8   : > { %v1839_v56 = vpop.f32.mrf.mxu0 }
  0xf9   : > { %v598_v58 = vadd.f32 %v1839_v56, %v2290_v41  ;;  %1880 = vmatprep.mubr.bf16.mxu1 %v729_v54  ;;  %v701_v0 = vmax.f32 %v587_v57, 0.0 }
  0xfa   : > { %v589_v60 = vpop.f32.mrf.mxu0  ;;  %1881 = vmatmul.mubr.bf16.vlgmr.msra.gmra.mxu1 %v730_v55 }
  0xfb   : > { %v590_v61 = vadd.f32 %v2290_v41, %v589_v60  ;;  %v704_v62 = vmax.f32 %v598_v58, 0.0 }
  0xfc   : > { %v1842_v63 = vpop.f32.mrf.mxu0 }
  0xfd   : > { %v702_v1 = vmax.f32 %v590_v61, 0.0  ;;  %v732_v5 = vpack.c.bf16 %v704_v62, %v703_v2  ;;  %v611_v9 = vadd.f32 %v1842_v63, %v2290_v41 }
  0xfe   : > { %v602_v3 = vpop.f32.mrf.mxu0 }
  0xff   : > { %v731_v4 = vpack.c.bf16 %v702_v1, %v701_v0  ;;  %v603_v7 = vadd.f32 %v2290_v41, %v602_v3  ;;  %v707_v16 = vmax.f32 %v611_v9, 0.0 }
 0x100   : > { %v1843_v6 = vpop.f32.mrf.mxu0 }
 0x101   : > { %v614_v8 = vadd.f32 %v1843_v6, %v2290_v41  ;;  %1884 = vmatprep.mubr.bf16.mxu1 %v731_v4  ;;  %v705_v14 = vmax.f32 %v603_v7, 0.0 }
 0x102   : > { %v605_v10 = vpop.f32.mrf.mxu0  ;;  %1885 = vmatmul.mubr.bf16.gmra.mxu1 %v732_v5 }
 0x103   : > { %v606_v11 = vadd.f32 %v2290_v41, %v605_v10  ;;  %v708_v12 = vmax.f32 %v614_v8, 0.0 }
 0x104   : > { %v1846_v13 = vpop.f32.mrf.mxu0 }
 0x105   : > { %v706_v15 = vmax.f32 %v606_v11, 0.0  ;;  %v734_v19 = vpack.c.bf16 %v708_v12, %v707_v16  ;;  %v627_v23 = vadd.f32 %v1846_v13, %v2290_v41 }
 0x106   : > { %v618_v17 = vpop.f32.mrf.mxu0 }
 0x107   : > { %v733_v18 = vpack.c.bf16 %v706_v15, %v705_v14  ;;  %v619_v21 = vadd.f32 %v2290_v41, %v618_v17  ;;  %v711_v30 = vmax.f32 %v627_v23, 0.0 }
 0x108   : > { %v1847_v20 = vpop.f32.mrf.mxu0 }
 0x109   : > { %v630_v22 = vadd.f32 %v1847_v20, %v2290_v41  ;;  %1888 = vmatprep.mubr.bf16.mxu1 %v733_v18  ;;  %v709_v28 = vmax.f32 %v619_v21, 0.0 }
 0x10a   : > { %v621_v24 = vpop.f32.mrf.mxu0  ;;  %1889 = vmatmul.mubr.bf16.gmra.mxu1 %v734_v19 }
 0x10b   : > { %v622_v25 = vadd.f32 %v2290_v41, %v621_v24  ;;  %v712_v26 = vmax.f32 %v630_v22, 0.0 }
 0x10c   : > { %v1850_v27 = vpop.f32.mrf.mxu0 }
 0x10d   : > { %v710_v29 = vmax.f32 %v622_v25, 0.0  ;;  %v736_v33 = vpack.c.bf16 %v712_v26, %v711_v30  ;;  %v643_v37 = vadd.f32 %v1850_v27, %v2290_v41  ;;  %v2055_v25 = vld [vmem:[%s2508_s5] sm:$0xff]   ;;  %v2056_v26 = vld [vmem:[%s2510_s7 + $0x38] sm:$0xff]   ;;  %v2058_v27 = vld [vmem:[%s2510_s7 + $0x28] sm:$0xff]  }
 0x10e   : > { %v634_v31 = vpop.f32.mrf.mxu0  ;;  %1926 = vmatprep.subr.bf16.mxu0 %v2055_v25  ;;  %1960 = vmatprep.subr.bf16.mxu1 %v2056_v26  ;;  %v2061_v30 = vld [vmem:[%s2510_s7 + $0x10] sm:$0xff]  }
 0x10f   : > { %v735_v32 = vpack.c.bf16 %v710_v29, %v709_v28  ;;  %v635_v35 = vadd.f32 %v2290_v41, %v634_v31  ;;  %v715_v45 = vmax.f32 %v643_v37, 0.0  ;;  %1927 = vmatpush3.bf16.msra.mxu0 %v2055_v25  ;;  %1961 = vmatpush3.bf16.msra.mxu1 %v2056_v26  ;;  %v2059_v28 = vld [vmem:[%s2510_s7 + $0x20] sm:$0xff]   ;;  %v2060_v29 = vld [vmem:[%s2510_s7 + $0x18] sm:$0xff]   ;;  %v2062_v31 = vld [vmem:[%s2510_s7 + $0x8] sm:$0xff]  }
 0x110   : > { %v1851_v34 = vpop.f32.mrf.mxu0 }
 0x111   : > { %v646_v36 = vadd.f32 %v1851_v34, %v2290_v41  ;;  %1892 = vmatprep.mubr.bf16.mxu1 %v735_v32  ;;  %v713_v43 = vmax.f32 %v635_v35, 0.0  ;;  %v2351_v34 = vld [vmem:[%s2507_s4] ss:$0 sm:$0xff] }
 0x112   : > { %v637_v38 = vpop.f32.mrf.mxu0  ;;  %1893 = vmatmul.mubr.bf16.gmra.mxu1 %v736_v33 }
 0x113   : > { %v638_v39 = vadd.f32 %v2290_v41, %v637_v38  ;;  %v716_v40 = vmax.f32 %v646_v36, 0.0 }
 0x114   : > { %v1854_v42 = vpop.f32.mrf.mxu0 }
 0x115   : > { %v714_v44 = vmax.f32 %v638_v39, 0.0  ;;  %v738_v48 = vpack.c.bf16 %v716_v40, %v715_v45  ;;  %v659_v52 = vadd.f32 %v1854_v42, %v2290_v41 }
 0x116   : > { %v650_v46 = vpop.f32.mrf.mxu0 }
 0x117   : > { %v737_v47 = vpack.c.bf16 %v714_v44, %v713_v43  ;;  %v651_v50 = vadd.f32 %v2290_v41, %v650_v46  ;;  %v719_v59 = vmax.f32 %v659_v52, 0.0 }
 0x118   : > { %v1855_v49 = vpop.f32.mrf.mxu0 }
 0x119   : > { %v662_v51 = vadd.f32 %v1855_v49, %v2290_v41  ;;  %1896 = vmatprep.mubr.bf16.mxu1 %v737_v47  ;;  %v717_v57 = vmax.f32 %v651_v50, 0.0 }
 0x11a   : > { %v653_v53 = vpop.f32.mrf.mxu0  ;;  %1897 = vmatmul.mubr.bf16.gmra.mxu1 %v738_v48 }
 0x11b   : > { %v654_v54 = vadd.f32 %v2290_v41, %v653_v53  ;;  %v720_v55 = vmax.f32 %v662_v51, 0.0 }
 0x11c   : > { %v1858_v56 = vpop.f32.mrf.mxu0 }
 0x11d   : > { %v718_v58 = vmax.f32 %v654_v54, 0.0  ;;  %v740_v62 = vpack.c.bf16 %v720_v55, %v719_v59  ;;  %v675_v2 = vadd.f32 %v1858_v56, %v2290_v41 }
 0x11e   : > { %v666_v60 = vpop.f32.mrf.mxu0 }
 0x11f   : > { %v739_v61 = vpack.c.bf16 %v718_v58, %v717_v57  ;;  %v667_v0 = vadd.f32 %v2290_v41, %v666_v60  ;;  %v723_v9 = vmax.f32 %v675_v2, 0.0 }
 0x120   : > { %v1859_v63 = vpop.f32.mrf.mxu0 }
 0x121   : > { %v678_v1 = vadd.f32 %v1859_v63, %v2290_v41  ;;  %1900 = vmatprep.mubr.bf16.mxu1 %v739_v61  ;;  %v721_v7 = vmax.f32 %v667_v0, 0.0 }
 0x122   : > { %v669_v3 = vpop.f32.mrf.mxu0  ;;  %1901 = vmatmul.mubr.bf16.gmra.mxu1 %v740_v62 }
 0x123   : > { %v670_v4 = vadd.f32 %v2290_v41, %v669_v3  ;;  %v724_v5 = vmax.f32 %v678_v1, 0.0 }
 0x124   : > { %v1862_v6 = vpop.f32.mrf.mxu0 }
 0x125   : > { %v722_v8 = vmax.f32 %v670_v4, 0.0  ;;  %v742_v12 = vpack.c.bf16 %v724_v5, %v723_v9  ;;  %v691_v16 = vadd.f32 %v1862_v6, %v2290_v41 }
 0x126   : > { %v682_v10 = vpop.f32.mrf.mxu0 }
 0x127   : > { %v741_v11 = vpack.c.bf16 %v722_v8, %v721_v7  ;;  %v683_v14 = vadd.f32 %v2290_v41, %v682_v10  ;;  %v727_v22 = vmax.f32 %v691_v16, 0.0 }
 0x128   : > { %v1863_v13 = vpop.f32.mrf.mxu0 }
 0x129   : > { %v694_v15 = vadd.f32 %v1863_v13, %v2290_v41  ;;  %1904 = vmatprep.mubr.bf16.mxu1 %v741_v11  ;;  %v725_v20 = vmax.f32 %v683_v14, 0.0 }
 0x12a   : > { %v685_v17 = vpop.f32.mrf.mxu0  ;;  %1905 = vmatmul.mubr.bf16.gmra.mxu1 %v742_v12 }
 0x12b   : > { %v686_v18 = vadd.f32 %v2290_v41, %v685_v17  ;;  %v728_v19 = vmax.f32 %v694_v15, 0.0  ;;  %v2057_v41 = vld [vmem:[%s2510_s7 + $0x30] sm:$0xff]  }
 0x12c   : > { %1962 = vmatprep.subr.bf16.mxu1 %v2057_v41 }
 0x12d   : > { %v726_v21 = vmax.f32 %v686_v18, 0.0  ;;  %v744_v24 = vpack.c.bf16 %v728_v19, %v727_v22  ;;  %1963 = vmatpush3.bf16.msra.mxu1 %v2057_v41 }
 0x12e   : > { %1964 = vmatprep.subr.bf16.mxu1 %v2058_v27 }
 0x12f   : > { %v743_v23 = vpack.c.bf16 %v726_v21, %v725_v20 }
 0x131   : > { %1908 = vmatprep.mubr.bf16.mxu1 %v743_v23  ;;  %1965 = vmatpush3.bf16.msra.mxu1 %v2058_v27 }
 0x132   : > { %1909 = vmatmul.mubr.bf16.gmra.mxu1 %v744_v24  ;;  %1966 = vmatprep.subr.bf16.mxu1 %v2059_v28 }
 0x135   : > { %1967 = vmatpush3.bf16.msra.mxu1 %v2059_v28 }
 0x136   : > { %1968 = vmatprep.subr.bf16.mxu1 %v2060_v29 }
 0x139   : > { %1969 = vmatpush3.bf16.msra.mxu1 %v2060_v29 }
 0x13a   : > { %1970 = vmatprep.subr.bf16.mxu1 %v2061_v30 }
 0x13d   : > { %1971 = vmatpush3.bf16.msra.mxu1 %v2061_v30 }
 0x13e   : > { %1972 = vmatprep.subr.bf16.mxu1 %v2062_v31 }
 0x141   : > { %1973 = vmatpush3.bf16.msra.mxu1 %v2062_v31 }
 0x1ba   : > { %v1882_v32 = vpop.f32.mrf.mxu1 }
 0x1bb   : > { %v859_v38 = vadd.f32 %v1882_v32, %v2351_v34 }
 0x1bc   : > { %v850_v33 = vpop.f32.mrf.mxu1 }
 0x1bd   : > { %v851_v36 = vadd.f32 %v2351_v34, %v850_v33  ;;  %v979_v46 = vmax.f32 %v859_v38, 0.0 }
 0x1be   : > { %v1883_v35 = vpop.f32.mrf.mxu1 }
 0x1bf   : > { %v862_v37 = vadd.f32 %v1883_v35, %v2351_v34  ;;  %v977_v44 = vmax.f32 %v851_v36, 0.0 }
 0x1c0   : > { %v853_v39 = vpop.f32.mrf.mxu1 }
 0x1c1   : > { %v854_v40 = vadd.f32 %v2351_v34, %v853_v39  ;;  %v980_v42 = vmax.f32 %v862_v37, 0.0 }
 0x1c2   : > { %v1886_v43 = vpop.f32.mrf.mxu1 }
 0x1c3   : > { %v978_v45 = vmax.f32 %v854_v40, 0.0  ;;  %v1010_v49 = vpack.c.bf16 %v980_v42, %v979_v46  ;;  %v875_v53 = vadd.f32 %v1886_v43, %v2351_v34 }
 0x1c4   : > { %v866_v47 = vpop.f32.mrf.mxu1 }
 0x1c5   : > { %v1009_v48 = vpack.c.bf16 %v978_v45, %v977_v44  ;;  %v867_v51 = vadd.f32 %v2351_v34, %v866_v47  ;;  %v983_v60 = vmax.f32 %v875_v53, 0.0 }
 0x1c6   : > { %v1887_v50 = vpop.f32.mrf.mxu1 }
 0x1c7   : > { %v878_v52 = vadd.f32 %v1887_v50, %v2351_v34  ;;  %1928 = vmatprep.mubr.bf16.mxu0 %v1009_v48  ;;  %v981_v58 = vmax.f32 %v867_v51, 0.0 }
 0x1c8   : > { %v869_v54 = vpop.f32.mrf.mxu1  ;;  %1929 = vmatmul.mubr.bf16.vlgmr.msra.gmra.mxu0 %v1010_v49 }
 0x1c9   : > { %v870_v55 = vadd.f32 %v2351_v34, %v869_v54  ;;  %v984_v56 = vmax.f32 %v878_v52, 0.0 }
 0x1ca   : > { %v1890_v57 = vpop.f32.mrf.mxu1 }
 0x1cb   : > { %v982_v59 = vmax.f32 %v870_v55, 0.0  ;;  %v1012_v63 = vpack.c.bf16 %v984_v56, %v983_v60  ;;  %v891_v3 = vadd.f32 %v1890_v57, %v2351_v34 }
 0x1cc   : > { %v882_v61 = vpop.f32.mrf.mxu1 }
 0x1cd   : > { %v1011_v62 = vpack.c.bf16 %v982_v59, %v981_v58  ;;  %v883_v1 = vadd.f32 %v2351_v34, %v882_v61  ;;  %v987_v10 = vmax.f32 %v891_v3, 0.0 }
 0x1ce   : > { %v1891_v0 = vpop.f32.mrf.mxu1 }
 0x1cf   : > { %v894_v2 = vadd.f32 %v1891_v0, %v2351_v34  ;;  %1932 = vmatprep.mubr.bf16.mxu0 %v1011_v62  ;;  %v985_v8 = vmax.f32 %v883_v1, 0.0 }
 0x1d0   : > { %v885_v4 = vpop.f32.mrf.mxu1  ;;  %1933 = vmatmul.mubr.bf16.gmra.mxu0 %v1012_v63 }
 0x1d1   : > { %v886_v5 = vadd.f32 %v2351_v34, %v885_v4  ;;  %v988_v6 = vmax.f32 %v894_v2, 0.0 }
 0x1d2   : > { %v1894_v7 = vpop.f32.mrf.mxu1 }
 0x1d3   : > { %v986_v9 = vmax.f32 %v886_v5, 0.0  ;;  %v1014_v13 = vpack.c.bf16 %v988_v6, %v987_v10  ;;  %v907_v17 = vadd.f32 %v1894_v7, %v2351_v34 }
 0x1d4   : > { %v898_v11 = vpop.f32.mrf.mxu1 }
 0x1d5   : > { %v1013_v12 = vpack.c.bf16 %v986_v9, %v985_v8  ;;  %v899_v15 = vadd.f32 %v2351_v34, %v898_v11  ;;  %v991_v24 = vmax.f32 %v907_v17, 0.0 }
 0x1d6   : > { %v1895_v14 = vpop.f32.mrf.mxu1 }
 0x1d7   : > { %v910_v16 = vadd.f32 %v1895_v14, %v2351_v34  ;;  %1936 = vmatprep.mubr.bf16.mxu0 %v1013_v12  ;;  %v989_v22 = vmax.f32 %v899_v15, 0.0 }
 0x1d8   : > { %v901_v18 = vpop.f32.mrf.mxu1  ;;  %1937 = vmatmul.mubr.bf16.gmra.mxu0 %v1014_v13 }
 0x1d9   : > { %v902_v19 = vadd.f32 %v2351_v34, %v901_v18  ;;  %v992_v20 = vmax.f32 %v910_v16, 0.0 }
 0x1da   : > { %v1898_v21 = vpop.f32.mrf.mxu1 }
 0x1db   : > { %v990_v23 = vmax.f32 %v902_v19, 0.0  ;;  %v1016_v41 = vpack.c.bf16 %v992_v20, %v991_v24  ;;  %v923_v30 = vadd.f32 %v1898_v21, %v2351_v34  ;;  %v2063_v19 = vld [vmem:[%s2510_s7] sm:$0xff]  }
 0x1dc   : > { %v914_v25 = vpop.f32.mrf.mxu1  ;;  %1974 = vmatprep.subr.bf16.mxu1 %v2063_v19 }
 0x1dd   : > { %v1015_v26 = vpack.c.bf16 %v990_v23, %v989_v22  ;;  %v915_v28 = vadd.f32 %v2351_v34, %v914_v25  ;;  %v995_v38 = vmax.f32 %v923_v30, 0.0  ;;  %1975 = vmatpush3.bf16.msra.mxu1 %v2063_v19 }
 0x1de   : > { %v1899_v27 = vpop.f32.mrf.mxu1 }
 0x1df   : > { %v926_v29 = vadd.f32 %v1899_v27, %v2351_v34  ;;  %1940 = vmatprep.mubr.bf16.mxu0 %v1015_v26  ;;  %v993_v36 = vmax.f32 %v915_v28, 0.0 }
 0x1e0   : > { %v917_v31 = vpop.f32.mrf.mxu1  ;;  %1941 = vmatmul.mubr.bf16.gmra.mxu0 %v1016_v41 }
 0x1e1   : > { %v918_v32 = vadd.f32 %v2351_v34, %v917_v31  ;;  %v996_v33 = vmax.f32 %v926_v29, 0.0 }
 0x1e2   : > { %v1902_v35 = vpop.f32.mrf.mxu1 }
 0x1e3   : > { %v994_v37 = vmax.f32 %v918_v32, 0.0  ;;  %v1018_v42 = vpack.c.bf16 %v996_v33, %v995_v38  ;;  %v939_v46 = vadd.f32 %v1902_v35, %v2351_v34 }
 0x1e4   : > { %v930_v39 = vpop.f32.mrf.mxu1 }
 0x1e5   : > { %v1017_v40 = vpack.c.bf16 %v994_v37, %v993_v36  ;;  %v931_v44 = vadd.f32 %v2351_v34, %v930_v39  ;;  %v999_v53 = vmax.f32 %v939_v46, 0.0 }
 0x1e6   : > { %v1903_v43 = vpop.f32.mrf.mxu1 }
 0x1e7   : > { %v942_v45 = vadd.f32 %v1903_v43, %v2351_v34  ;;  %1944 = vmatprep.mubr.bf16.mxu0 %v1017_v40  ;;  %v997_v51 = vmax.f32 %v931_v44, 0.0 }
 0x1e8   : > { %v933_v47 = vpop.f32.mrf.mxu1  ;;  %1945 = vmatmul.mubr.bf16.gmra.mxu0 %v1018_v42 }
 0x1e9   : > { %v934_v48 = vadd.f32 %v2351_v34, %v933_v47  ;;  %v1000_v49 = vmax.f32 %v942_v45, 0.0 }
 0x1ea   : > { %v1906_v50 = vpop.f32.mrf.mxu1 }
 0x1eb   : > { %v998_v52 = vmax.f32 %v934_v48, 0.0  ;;  %v1020_v56 = vpack.c.bf16 %v1000_v49, %v999_v53  ;;  %v955_v60 = vadd.f32 %v1906_v50, %v2351_v34 }
 0x1ec   : > { %v946_v54 = vpop.f32.mrf.mxu1 }
 0x1ed   : > { %v1019_v55 = vpack.c.bf16 %v998_v52, %v997_v51  ;;  %v947_v58 = vadd.f32 %v2351_v34, %v946_v54  ;;  %v1003_v3 = vmax.f32 %v955_v60, 0.0 }
 0x1ee   : > { %v1907_v57 = vpop.f32.mrf.mxu1 }
 0x1ef   : > { %v958_v59 = vadd.f32 %v1907_v57, %v2351_v34  ;;  %1948 = vmatprep.mubr.bf16.mxu0 %v1019_v55  ;;  %v1001_v1 = vmax.f32 %v947_v58, 0.0 }
 0x1f0   : > { %v949_v61 = vpop.f32.mrf.mxu1  ;;  %1949 = vmatmul.mubr.bf16.gmra.mxu0 %v1020_v56 }
 0x1f1   : > { %v950_v62 = vadd.f32 %v2351_v34, %v949_v61  ;;  %v1004_v63 = vmax.f32 %v958_v59, 0.0 }
 0x1f2   : > { %v1910_v0 = vpop.f32.mrf.mxu1 }
 0x1f3   : > { %v1002_v2 = vmax.f32 %v950_v62, 0.0  ;;  %v1022_v6 = vpack.c.bf16 %v1004_v63, %v1003_v3  ;;  %v971_v10 = vadd.f32 %v1910_v0, %v2351_v34 }
 0x1f4   : > { %v962_v4 = vpop.f32.mrf.mxu1 }
 0x1f5   : > { %v1021_v5 = vpack.c.bf16 %v1002_v2, %v1001_v1  ;;  %v963_v8 = vadd.f32 %v2351_v34, %v962_v4  ;;  %v1007_v16 = vmax.f32 %v971_v10, 0.0 }
 0x1f6   : > { %v1911_v7 = vpop.f32.mrf.mxu1 }
 0x1f7   : > { %v974_v9 = vadd.f32 %v1911_v7, %v2351_v34  ;;  %1952 = vmatprep.mubr.bf16.mxu0 %v1021_v5  ;;  %v1005_v14 = vmax.f32 %v963_v8, 0.0 }
 0x1f8   : > { %v965_v11 = vpop.f32.mrf.mxu1  ;;  %1953 = vmatmul.mubr.bf16.gmra.mxu0 %v1022_v6 }
 0x1f9   : > { %v966_v12 = vadd.f32 %v2351_v34, %v965_v11  ;;  %v1008_v13 = vmax.f32 %v974_v9, 0.0  ;;  %v2391_v34 = vld [vmem:[%s2509_s6] ss:$0 sm:$0xff] }
 0x1fb   : > { %v1006_v15 = vmax.f32 %v966_v12, 0.0  ;;  %v1024_v18 = vpack.c.bf16 %v1008_v13, %v1007_v16 }
 0x1fd   : > { %v1023_v17 = vpack.c.bf16 %v1006_v15, %v1005_v14 }
 0x1ff   : > { %1956 = vmatprep.mubr.bf16.mxu0 %v1023_v17 }
 0x200   : > { %1957 = vmatmul.mubr.bf16.gmra.mxu0 %v1024_v18 }
 0x288   : > { %v1930_v20 = vpop.f32.mrf.mxu0 }
 0x289   : > { %v1139_v25 = vadd.f32 %v1930_v20, %v2391_v34 }
 0x28a   : > { %v1130_v21 = vpop.f32.mrf.mxu0 }
 0x28b   : > { %v1131_v23 = vadd.f32 %v2391_v34, %v1130_v21  ;;  %v1259_v31 = vmax.f32 %v1139_v25, 0.0 }
 0x28c   : > { %v1931_v22 = vpop.f32.mrf.mxu0 }
 0x28d   : > { %v1142_v24 = vadd.f32 %v1931_v22, %v2391_v34  ;;  %v1257_v29 = vmax.f32 %v1131_v23, 0.0 }
 0x28e   : > { %v1133_v26 = vpop.f32.mrf.mxu0 }
 0x28f   : > { %v1134_v41 = vadd.f32 %v2391_v34, %v1133_v26  ;;  %v1260_v27 = vmax.f32 %v1142_v24, 0.0 }
 0x290   : > { %v1934_v28 = vpop.f32.mrf.mxu0 }
 0x291   : > { %v1258_v30 = vmax.f32 %v1134_v41, 0.0  ;;  %v1290_v35 = vpack.c.bf16 %v1260_v27, %v1259_v31  ;;  %v1155_v39 = vadd.f32 %v1934_v28, %v2391_v34 }
 0x292   : > { %v1146_v32 = vpop.f32.mrf.mxu0 }
 0x293   : > { %v1289_v33 = vpack.c.bf16 %v1258_v30, %v1257_v29  ;;  %v1147_v37 = vadd.f32 %v2391_v34, %v1146_v32  ;;  %v1263_v47 = vmax.f32 %v1155_v39, 0.0 }
 0x294   : > { %v1935_v36 = vpop.f32.mrf.mxu0 }
 0x295   : > { %v1158_v38 = vadd.f32 %v1935_v36, %v2391_v34  ;;  %1976 = vmatprep.mubr.bf16.mxu1 %v1289_v33  ;;  %v1261_v45 = vmax.f32 %v1147_v37, 0.0 }
 0x296   : > { %v1149_v40 = vpop.f32.mrf.mxu0  ;;  %1977 = vmatmul.mubr.bf16.vlgmr.msra.gmra.mxu1 %v1290_v35 }
 0x297   : > { %v1150_v42 = vadd.f32 %v2391_v34, %v1149_v40  ;;  %v1264_v43 = vmax.f32 %v1158_v38, 0.0 }
 0x298   : > { %v1938_v44 = vpop.f32.mrf.mxu0 }
 0x299   : > { %v1262_v46 = vmax.f32 %v1150_v42, 0.0  ;;  %v1292_v50 = vpack.c.bf16 %v1264_v43, %v1263_v47  ;;  %v1171_v54 = vadd.f32 %v1938_v44, %v2391_v34 }
 0x29a   : > { %v1162_v48 = vpop.f32.mrf.mxu0 }
 0x29b   : > { %v1291_v49 = vpack.c.bf16 %v1262_v46, %v1261_v45  ;;  %v1163_v52 = vadd.f32 %v2391_v34, %v1162_v48  ;;  %v1267_v61 = vmax.f32 %v1171_v54, 0.0 }
 0x29c   : > { %v1939_v51 = vpop.f32.mrf.mxu0 }
 0x29d   : > { %v1174_v53 = vadd.f32 %v1939_v51, %v2391_v34  ;;  %1980 = vmatprep.mubr.bf16.mxu1 %v1291_v49  ;;  %v1265_v59 = vmax.f32 %v1163_v52, 0.0 }
 0x29e   : > { %v1165_v55 = vpop.f32.mrf.mxu0  ;;  %1981 = vmatmul.mubr.bf16.gmra.mxu1 %v1292_v50 }
 0x29f   : > { %v1166_v56 = vadd.f32 %v2391_v34, %v1165_v55  ;;  %v1268_v57 = vmax.f32 %v1174_v53, 0.0 }
 0x2a0   : > { %v1942_v58 = vpop.f32.mrf.mxu0 }
 0x2a1   : > { %v1266_v60 = vmax.f32 %v1166_v56, 0.0  ;;  %v1294_v0 = vpack.c.bf16 %v1268_v57, %v1267_v61  ;;  %v1187_v4 = vadd.f32 %v1942_v58, %v2391_v34 }
 0x2a2   : > { %v1178_v62 = vpop.f32.mrf.mxu0 }
 0x2a3   : > { %v1293_v63 = vpack.c.bf16 %v1266_v60, %v1265_v59  ;;  %v1179_v2 = vadd.f32 %v2391_v34, %v1178_v62  ;;  %v1271_v11 = vmax.f32 %v1187_v4, 0.0 }
 0x2a4   : > { %v1943_v1 = vpop.f32.mrf.mxu0 }
 0x2a5   : > { %v1190_v3 = vadd.f32 %v1943_v1, %v2391_v34  ;;  %1984 = vmatprep.mubr.bf16.mxu1 %v1293_v63  ;;  %v1269_v9 = vmax.f32 %v1179_v2, 0.0 }
 0x2a6   : > { %v1181_v5 = vpop.f32.mrf.mxu0  ;;  %1985 = vmatmul.mubr.bf16.gmra.mxu1 %v1294_v0 }
 0x2a7   : > { %v1182_v6 = vadd.f32 %v2391_v34, %v1181_v5  ;;  %v1272_v7 = vmax.f32 %v1190_v3, 0.0 }
 0x2a8   : > { %v1946_v8 = vpop.f32.mrf.mxu0 }
 0x2a9   : > { %v1270_v10 = vmax.f32 %v1182_v6, 0.0  ;;  %v1296_v14 = vpack.c.bf16 %v1272_v7, %v1271_v11  ;;  %v1203_v18 = vadd.f32 %v1946_v8, %v2391_v34  ;;  %v2428_v6 = vld [vmem:[%s2511_s8] ss:$0 sm:$0xff] }
 0x2aa   : > { %v1194_v12 = vpop.f32.mrf.mxu0 }
 0x2ab   : > { %v1295_v13 = vpack.c.bf16 %v1270_v10, %v1269_v9  ;;  %v1195_v16 = vadd.f32 %v2391_v34, %v1194_v12  ;;  %v1275_v25 = vmax.f32 %v1203_v18, 0.0 }
 0x2ac   : > { %v1947_v15 = vpop.f32.mrf.mxu0 }
 0x2ad   : > { %v1206_v17 = vadd.f32 %v1947_v15, %v2391_v34  ;;  %1988 = vmatprep.mubr.bf16.mxu1 %v1295_v13  ;;  %v1273_v23 = vmax.f32 %v1195_v16, 0.0 }
 0x2ae   : > { %v1197_v19 = vpop.f32.mrf.mxu0  ;;  %1989 = vmatmul.mubr.bf16.gmra.mxu1 %v1296_v14 }
 0x2af   : > { %v1198_v20 = vadd.f32 %v2391_v34, %v1197_v19  ;;  %v1276_v21 = vmax.f32 %v1206_v17, 0.0 }
 0x2b0   : > { %v1950_v22 = vpop.f32.mrf.mxu0 }
 0x2b1   : > { %v1274_v24 = vmax.f32 %v1198_v20, 0.0  ;;  %v1298_v27 = vpack.c.bf16 %v1276_v21, %v1275_v25  ;;  %v1219_v31 = vadd.f32 %v1950_v22, %v2391_v34 }
 0x2b2   : > { %v1210_v26 = vpop.f32.mrf.mxu0 }
 0x2b3   : > { %v1297_v41 = vpack.c.bf16 %v1274_v24, %v1273_v23  ;;  %v1211_v29 = vadd.f32 %v2391_v34, %v1210_v26  ;;  %v1279_v39 = vmax.f32 %v1219_v31, 0.0 }
 0x2b4   : > { %v1951_v28 = vpop.f32.mrf.mxu0 }
 0x2b5   : > { %v1222_v30 = vadd.f32 %v1951_v28, %v2391_v34  ;;  %1992 = vmatprep.mubr.bf16.mxu1 %v1297_v41  ;;  %v1277_v37 = vmax.f32 %v1211_v29, 0.0 }
 0x2b6   : > { %v1213_v32 = vpop.f32.mrf.mxu0  ;;  %1993 = vmatmul.mubr.bf16.gmra.mxu1 %v1298_v27 }
 0x2b7   : > { %v1214_v33 = vadd.f32 %v2391_v34, %v1213_v32  ;;  %v1280_v35 = vmax.f32 %v1222_v30, 0.0 }
 0x2b8   : > { %v1954_v36 = vpop.f32.mrf.mxu0 }
 0x2b9   : > { %v1278_v38 = vmax.f32 %v1214_v33, 0.0  ;;  %v1300_v43 = vpack.c.bf16 %v1280_v35, %v1279_v39  ;;  %v1235_v47 = vadd.f32 %v1954_v36, %v2391_v34 }
 0x2ba   : > { %v1226_v40 = vpop.f32.mrf.mxu0 }
 0x2bb   : > { %v1299_v42 = vpack.c.bf16 %v1278_v38, %v1277_v37  ;;  %v1227_v45 = vadd.f32 %v2391_v34, %v1226_v40  ;;  %v1283_v54 = vmax.f32 %v1235_v47, 0.0 }
 0x2bc   : > { %v1955_v44 = vpop.f32.mrf.mxu0 }
 0x2bd   : > { %v1238_v46 = vadd.f32 %v1955_v44, %v2391_v34  ;;  %1996 = vmatprep.mubr.bf16.mxu1 %v1299_v42  ;;  %v1281_v52 = vmax.f32 %v1227_v45, 0.0 }
 0x2be   : > { %v1229_v48 = vpop.f32.mrf.mxu0  ;;  %1997 = vmatmul.mubr.bf16.gmra.mxu1 %v1300_v43 }
 0x2bf   : > { %v1230_v49 = vadd.f32 %v2391_v34, %v1229_v48  ;;  %v1284_v50 = vmax.f32 %v1238_v46, 0.0 }
 0x2c0   : > { %v1958_v51 = vpop.f32.mrf.mxu0 }
 0x2c1   : > { %v1282_v53 = vmax.f32 %v1230_v49, 0.0  ;;  %v1302_v57 = vpack.c.bf16 %v1284_v50, %v1283_v54  ;;  %v1251_v61 = vadd.f32 %v1958_v51, %v2391_v34 }
 0x2c2   : > { %v1242_v55 = vpop.f32.mrf.mxu0 }
 0x2c3   : > { %v1301_v56 = vpack.c.bf16 %v1282_v53, %v1281_v52  ;;  %v1243_v59 = vadd.f32 %v2391_v34, %v1242_v55  ;;  %v1287_v3 = vmax.f32 %v1251_v61, 0.0 }
 0x2c4   : > { %v1959_v58 = vpop.f32.mrf.mxu0 }
 0x2c5   : > { %v1254_v60 = vadd.f32 %v1959_v58, %v2391_v34  ;;  %2000 = vmatprep.mubr.bf16.mxu1 %v1301_v56  ;;  %v1285_v1 = vmax.f32 %v1243_v59, 0.0 }
 0x2c6   : > { %v1245_v62 = vpop.f32.mrf.mxu0  ;;  %2001 = vmatmul.mubr.bf16.gmra.mxu1 %v1302_v57 }
 0x2c7   : > { %v1246_v63 = vadd.f32 %v2391_v34, %v1245_v62  ;;  %v1288_v0 = vmax.f32 %v1254_v60, 0.0 }
 0x2c9   : > { %v1286_v2 = vmax.f32 %v1246_v63, 0.0  ;;  %v1304_v5 = vpack.c.bf16 %v1288_v0, %v1287_v3 }
 0x2cb   : > { %v1303_v4 = vpack.c.bf16 %v1286_v2, %v1285_v1 }
 0x2cd   : > { %2004 = vmatprep.mubr.bf16.mxu1 %v1303_v4 }
 0x2ce   : > { %2005 = vmatmul.mubr.bf16.gmra.mxu1 %v1304_v5 }
 0x356   : > { %v1978_v7 = vpop.f32.mrf.mxu1 }
 0x357   : > { %v1419_v8 = vadd.f32 %v1978_v7, %v2428_v6 }
 0x358   : > { %v1410_v9 = vpop.f32.mrf.mxu1 }
 0x359   : > { %2064 = vtanh.f32 %v1419_v8  ;;  %v1411_v34 = vadd.f32 %v2428_v6, %v1410_v9 }
 0x35a   : > { %v1979_v10 = vpop.f32.mrf.mxu1 }
 0x35b   : > { %2066 = vtanh.f32 %v1411_v34  ;;  %v1422_v11 = vadd.f32 %v1979_v10, %v2428_v6 }
 0x35c   : > { %v1413_v12 = vpop.f32.mrf.mxu1 }
 0x35d   : > { %2068 = vtanh.f32 %v1422_v11  ;;  %v1414_v13 = vadd.f32 %v2428_v6, %v1413_v12 }
 0x35e   : > { %v1982_v14 = vpop.f32.mrf.mxu1 }
 0x35f   : > { %2070 = vtanh.f32 %v1414_v13  ;;  %v1435_v15 = vadd.f32 %v1982_v14, %v2428_v6 }
 0x360   : > { %v1426_v16 = vpop.f32.mrf.mxu1 }
 0x361   : > { %2072 = vtanh.f32 %v1435_v15  ;;  %v1427_v17 = vadd.f32 %v2428_v6, %v1426_v16 }
 0x362   : > { %v1983_v18 = vpop.f32.mrf.mxu1 }
 0x363   : > { %2074 = vtanh.f32 %v1427_v17  ;;  %v1438_v19 = vadd.f32 %v1983_v18, %v2428_v6 }
 0x364   : > { %v1429_v20 = vpop.f32.mrf.mxu1 }
 0x365   : > { %2076 = vtanh.f32 %v1438_v19  ;;  %v1430_v21 = vadd.f32 %v2428_v6, %v1429_v20 }
 0x366   : > { %v2065_v22 = vpop.eup %2064  ;;  %v1986_v23 = vpop.f32.mrf.mxu1 }
 0x367   : > { %1571 = vst [vmem:[%s2441_s15 + $0x10] sm:$0xff] %v2065_v22  ;;  %2078 = vtanh.f32 %v1430_v21  ;;  %v1451_v24 = vadd.f32 %v1986_v23, %v2428_v6 }
 0x368   : > { %v2067_v25 = vpop.eup %2066  ;;  %v1442_v26 = vpop.f32.mrf.mxu1 }
 0x369   : > { %1569 = vst [vmem:[%s2441_s15] sm:$0xff] %v2067_v25  ;;  %2080 = vtanh.f32 %v1451_v24  ;;  %v1443_v41 = vadd.f32 %v2428_v6, %v1442_v26 }
 0x36a   : > { %v2069_v27 = vpop.eup %2068  ;;  %v1987_v28 = vpop.f32.mrf.mxu1 }
 0x36b   : > { %1572 = vst [vmem:[%s2441_s15 + $0x18] sm:$0xff] %v2069_v27  ;;  %2082 = vtanh.f32 %v1443_v41  ;;  %v1454_v29 = vadd.f32 %v1987_v28, %v2428_v6 }
 0x36c   : > { %v2071_v30 = vpop.eup %2070  ;;  %v1445_v31 = vpop.f32.mrf.mxu1 }
 0x36d   : > { %1570 = vst [vmem:[%s2441_s15 + $0x8] sm:$0xff] %v2071_v30  ;;  %2084 = vtanh.f32 %v1454_v29  ;;  %v1446_v32 = vadd.f32 %v2428_v6, %v1445_v31 }
 0x36e   : > { %v2073_v33 = vpop.eup %2072  ;;  %v1990_v35 = vpop.f32.mrf.mxu1 }
 0x36f   : > { %1575 = vst [vmem:[%s2441_s15 + $0x30] sm:$0xff] %v2073_v33  ;;  %2086 = vtanh.f32 %v1446_v32  ;;  %v1467_v36 = vadd.f32 %v1990_v35, %v2428_v6 }
 0x370   : > { %v2075_v37 = vpop.eup %2074  ;;  %v1458_v38 = vpop.f32.mrf.mxu1 }
 0x371   : > { %1573 = vst [vmem:[%s2441_s15 + $0x20] sm:$0xff] %v2075_v37  ;;  %2088 = vtanh.f32 %v1467_v36  ;;  %v1459_v39 = vadd.f32 %v2428_v6, %v1458_v38 }
 0x372   : > { %v2077_v40 = vpop.eup %2076  ;;  %v1991_v42 = vpop.f32.mrf.mxu1 }
 0x373   : > { %1576 = vst [vmem:[%s2441_s15 + $0x38] sm:$0xff] %v2077_v40  ;;  %2090 = vtanh.f32 %v1459_v39  ;;  %v1470_v43 = vadd.f32 %v1991_v42, %v2428_v6 }
 0x374   : > { %v2079_v44 = vpop.eup %2078  ;;  %v1461_v45 = vpop.f32.mrf.mxu1 }
 0x375   : > { %1574 = vst [vmem:[%s2441_s15 + $0x28] sm:$0xff] %v2079_v44  ;;  %2092 = vtanh.f32 %v1470_v43  ;;  %v1462_v46 = vadd.f32 %v2428_v6, %v1461_v45 }
 0x376   : > { %v2081_v47 = vpop.eup %2080  ;;  %v1994_v48 = vpop.f32.mrf.mxu1 }
 0x377   : > { %1579 = vst [vmem:[%s2441_s15 + $0x50] sm:$0xff] %v2081_v47  ;;  %2094 = vtanh.f32 %v1462_v46  ;;  %v1483_v49 = vadd.f32 %v1994_v48, %v2428_v6 }
 0x378   : > { %v2083_v50 = vpop.eup %2082  ;;  %v1474_v51 = vpop.f32.mrf.mxu1 }
 0x379   : > { %1577 = vst [vmem:[%s2441_s15 + $0x40] sm:$0xff] %v2083_v50  ;;  %2096 = vtanh.f32 %v1483_v49  ;;  %v1475_v52 = vadd.f32 %v2428_v6, %v1474_v51 }
 0x37a   : > { %v2085_v53 = vpop.eup %2084  ;;  %v1995_v54 = vpop.f32.mrf.mxu1 }
 0x37b   : > { %1580 = vst [vmem:[%s2441_s15 + $0x58] sm:$0xff] %v2085_v53  ;;  %2098 = vtanh.f32 %v1475_v52  ;;  %v1486_v55 = vadd.f32 %v1995_v54, %v2428_v6 }
 0x37c   : > { %v2087_v56 = vpop.eup %2086  ;;  %v1477_v57 = vpop.f32.mrf.mxu1 }
 0x37d   : > { %1578 = vst [vmem:[%s2441_s15 + $0x48] sm:$0xff] %v2087_v56  ;;  %2100 = vtanh.f32 %v1486_v55  ;;  %v1478_v58 = vadd.f32 %v2428_v6, %v1477_v57 }
 0x37e   : > { %v2089_v59 = vpop.eup %2088  ;;  %v1998_v60 = vpop.f32.mrf.mxu1 }
 0x37f   : > { %1583 = vst [vmem:[%s2441_s15 + $0x70] sm:$0xff] %v2089_v59  ;;  %2102 = vtanh.f32 %v1478_v58  ;;  %v1499_v61 = vadd.f32 %v1998_v60, %v2428_v6 }
 0x380   : > { %v2091_v62 = vpop.eup %2090  ;;  %v1490_v63 = vpop.f32.mrf.mxu1 }
 0x381   : > { %1581 = vst [vmem:[%s2441_s15 + $0x60] sm:$0xff] %v2091_v62  ;;  %2104 = vtanh.f32 %v1499_v61  ;;  %v1491_v0 = vadd.f32 %v2428_v6, %v1490_v63 }
 0x382   : > { %v2093_v1 = vpop.eup %2092  ;;  %v1999_v2 = vpop.f32.mrf.mxu1 }
 0x383   : > { %1584 = vst [vmem:[%s2441_s15 + $0x78] sm:$0xff] %v2093_v1  ;;  %2106 = vtanh.f32 %v1491_v0  ;;  %v1502_v3 = vadd.f32 %v1999_v2, %v2428_v6 }
 0x384   : > { %v2095_v4 = vpop.eup %2094  ;;  %v1493_v5 = vpop.f32.mrf.mxu1 }
 0x385   : > { %1582 = vst [vmem:[%s2441_s15 + $0x68] sm:$0xff] %v2095_v4  ;;  %2108 = vtanh.f32 %v1502_v3  ;;  %v1494_v7 = vadd.f32 %v2428_v6, %v1493_v5 }
 0x386   : > { %v2097_v8 = vpop.eup %2096  ;;  %v2002_v9 = vpop.f32.mrf.mxu1 }
 0x387   : > { %1587 = vst [vmem:[%s2441_s15 + $0x90] sm:$0xff] %v2097_v8  ;;  %2110 = vtanh.f32 %v1494_v7  ;;  %v1515_v34 = vadd.f32 %v2002_v9, %v2428_v6 }
 0x388   : > { %v2099_v10 = vpop.eup %2098  ;;  %v1506_v11 = vpop.f32.mrf.mxu1 }
 0x389   : > { %1585 = vst [vmem:[%s2441_s15 + $0x80] sm:$0xff] %v2099_v10  ;;  %2112 = vtanh.f32 %v1515_v34  ;;  %v1507_v12 = vadd.f32 %v2428_v6, %v1506_v11 }
 0x38a   : > { %v2101_v13 = vpop.eup %2100  ;;  %v2003_v14 = vpop.f32.mrf.mxu1 }
 0x38b   : > { %1588 = vst [vmem:[%s2441_s15 + $0x98] sm:$0xff] %v2101_v13  ;;  %2114 = vtanh.f32 %v1507_v12  ;;  %v1518_v15 = vadd.f32 %v2003_v14, %v2428_v6 }
 0x38c   : > { %v2103_v16 = vpop.eup %2102  ;;  %v1509_v17 = vpop.f32.mrf.mxu1 }
 0x38d   : > { %1586 = vst [vmem:[%s2441_s15 + $0x88] sm:$0xff] %v2103_v16  ;;  %2116 = vtanh.f32 %v1518_v15  ;;  %v1510_v18 = vadd.f32 %v2428_v6, %v1509_v17 }
 0x38e   : > { %v2105_v19 = vpop.eup %2104  ;;  %v2006_v20 = vpop.f32.mrf.mxu1 }
 0x38f   : > { %1591 = vst [vmem:[%s2441_s15 + $0xb0] sm:$0xff] %v2105_v19  ;;  %2118 = vtanh.f32 %v1510_v18  ;;  %v1531_v21 = vadd.f32 %v2006_v20, %v2428_v6 }
 0x390   : > { %v2107_v22 = vpop.eup %2106  ;;  %v1522_v23 = vpop.f32.mrf.mxu1 }
 0x391   : > { %1589 = vst [vmem:[%s2441_s15 + $0xa0] sm:$0xff] %v2107_v22  ;;  %2120 = vtanh.f32 %v1531_v21  ;;  %v1523_v24 = vadd.f32 %v2428_v6, %v1522_v23 }
 0x392   : > { %v2109_v25 = vpop.eup %2108  ;;  %v2007_v26 = vpop.f32.mrf.mxu1 }
 0x393   : > { %1592 = vst [vmem:[%s2441_s15 + $0xb8] sm:$0xff] %v2109_v25  ;;  %2122 = vtanh.f32 %v1523_v24  ;;  %v1534_v41 = vadd.f32 %v2007_v26, %v2428_v6 }
 0x394   : > { %v2111_v27 = vpop.eup %2110  ;;  %v1525_v28 = vpop.f32.mrf.mxu1 }
 0x395   : > { %1590 = vst [vmem:[%s2441_s15 + $0xa8] sm:$0xff] %v2111_v27  ;;  %2124 = vtanh.f32 %v1534_v41  ;;  %v1526_v29 = vadd.f32 %v2428_v6, %v1525_v28 }
 0x396   : > { %v2113_v30 = vpop.eup %2112 }
 0x397   : > { %1595 = vst [vmem:[%s2441_s15 + $0xd0] sm:$0xff] %v2113_v30  ;;  %2126 = vtanh.f32 %v1526_v29 }
 0x398   : > { %v2115_v31 = vpop.eup %2114 }
 0x399   : > { %1593 = vst [vmem:[%s2441_s15 + $0xc0] sm:$0xff] %v2115_v31 }
 0x39a   : > { %v2117_v32 = vpop.eup %2116 }
 0x39b   : > { %1596 = vst [vmem:[%s2441_s15 + $0xd8] sm:$0xff] %v2117_v32 }
 0x39c   : > { %v2119_v33 = vpop.eup %2118 }
 0x39d   : > { %1594 = vst [vmem:[%s2441_s15 + $0xc8] sm:$0xff] %v2119_v33 }
 0x39e   : > { %v2121_v35 = vpop.eup %2120 }
 0x39f   : > { %1599 = vst [vmem:[%s2441_s15 + $0xf0] sm:$0xff] %v2121_v35 }
 0x3a0   : > { %v2123_v36 = vpop.eup %2122 }
 0x3a1   : > { %1597 = vst [vmem:[%s2441_s15 + $0xe0] sm:$0xff] %v2123_v36 }
 0x3a2   : > { %v2125_v37 = vpop.eup %2124 }
 0x3a3   : > { %1600 = vst [vmem:[%s2441_s15 + $0xf8] sm:$0xff] %v2125_v37 }
 0x3a4   : > { %v2127_v38 = vpop.eup %2126 }
 0x3a5   : > { %1598 = vst [vmem:[%s2441_s15 + $0xe8] sm:$0xff] %v2127_v38 }
 0x3a6 PF: > { %s19_s30 = sadd.s32 1, %s2134_s30  }
 0x3a7   : > { %p16_p4 = scmp.ge.s32.totalorder %s19_s30, 10  }
 0x3a9   :  { %18 = sbr.rel (!%p16_p4) target bundleno = 1 (0x1), region = 86 }

</bundles_post_ra>
